<compile_context>
chip_gen: v7x
topology: tpu7x:2x2x1
jax: 0.10.0
libtpu: 0.0.40
codegen_flags: <defaults>
</compile_context>

<pallas_src>
import functools

import jax
import jax.numpy as jnp
from jax.experimental import pallas as pl
from jax.experimental.pallas import tpu as pltpu


def ad_forward_kernel(idx_ref, emb_ref, out_ref, *, num_pos, num_valid):
    """One grid step: score a block of S_BLK stacked samples and accumulate.

    idx_ref : (S_BLK, arity) int32, global rows [0, num_pos) are positives,
              rows [num_pos, num_valid) are flattened negatives, the rest is
              zero padding (masked out).
    emb_ref : (E, D) float32 embedding table (VMEM resident, constant index map).
    out_ref : (1, 1) float32 accumulator; holds the batch mean after the last step.
    """
    i = pl.program_id(0)

    @pl.when(i == 0)
    def _init():
        out_ref[...] = jnp.zeros_like(out_ref)

    idx = idx_ref[...]                                             # (S_BLK, arity) i32
    emb = emb_ref[...]                                             # (E, D)        f32
    s_blk, arity = idx.shape
    E, _ = emb.shape

    # Multi-hot counts: counts[s, e] = #{k : idx[s, k] == e}.
    # int32 accumulation, single cast to f32 before the MXU.
    ent_iota = jax.lax.broadcasted_iota(jnp.int32, (s_blk, E), 1)
    counts = (idx[:, 0:1] == ent_iota).astype(jnp.int32)
    for k in range(1, arity):                                      # arity is tiny & static
        counts = counts + (idx[:, k : k + 1] == ent_iota).astype(jnp.int32)
    counts_f = counts.astype(jnp.float32)

    # sum_k emb[idx[s, k]]  ==  counts @ emb   -- one MXU matmul per block.
    summed = jnp.dot(counts_f, emb, preferred_element_type=jnp.float32)   # (S_BLK, D)

    # ||.||_2^2 per row.
    sq = jnp.sum(summed * summed, axis=-1, keepdims=True)          # (S_BLK, 1)

    # Row classification (global row index): positive / negative / padding.
    row = i * s_blk + jax.lax.broadcasted_iota(jnp.int32, (s_blk, 1), 0)
    is_valid = row < num_valid
    is_neg = jnp.logical_and(row >= num_pos, is_valid)

    # Negative rows score tanh(1/x); exact reciprocal (approx misses 1e-4 tol).
    sq_eff = jnp.where(is_neg, pl.reciprocal(sq, approx=False), sq)
    # Keep padded rows finite through tanh/log, then zero them out.
    sq_eff = jnp.where(is_valid, sq_eff, 1.0)
    log_scores = jnp.where(is_valid, jnp.log(jnp.tanh(sq_eff)), 0.0)      # (S_BLK, 1)

    # mean_b( log p_b + sum_j log n_bj ) == sum(all valid rows) / B.
    out_ref[...] += jnp.sum(log_scores, keepdims=True)

    @pl.when(i == pl.num_programs(0) - 1)
    def _finalize():
        out_ref[...] = out_ref[...] * (1.0 / num_pos)


def ad_forward(x_pos, x_neg, emb, *, s_blk_max=1024):
    """Train-mode forward of AD: returns the scalar batch_score_mean."""
    x_pos = x_pos.astype(jnp.int32)
    x_neg = x_neg.astype(jnp.int32)

    B, arity = x_pos.shape
    _, num_neg, _ = x_neg.shape
    E, D = emb.shape
    S = B * (1 + num_neg)

    # Stack positive rows first, then all flattened negative rows -> (S, arity).
    stacked = jnp.concatenate([x_pos, x_neg.reshape(B * num_neg, arity)], axis=0)

    def _round_up(a, m):
        return (a + m - 1) // m * m

    # Tile the sample dimension; pad to a block multiple (padded rows masked in-kernel).
    s_blk = min(s_blk_max, _round_up(S, 8))
    s_pad = _round_up(S, s_blk)
    if s_pad != S:
        stacked = jnp.pad(stacked, ((0, s_pad - S), (0, 0)))
    n_blocks = s_pad // s_blk

    # Explicit scoped-VMEM budget: table (x2 buffers) + index block (x2) +
    # counts/matmul intermediates, with slack; capped at 64 MiB (valid on v7x).
    approx_bytes = 4 * (2 * E * D + 2 * s_blk * arity + 3 * s_blk * E + 2 * s_blk * D)
    vmem_limit = int(min(64 * 1024 * 1024, max(32 * 1024 * 1024, 2 * approx_bytes)))

    kernel = functools.partial(ad_forward_kernel, num_pos=B, num_valid=S)

    out = pl.pallas_call(
        kernel,
        out_shape=jax.ShapeDtypeStruct((1, 1), jnp.float32),
        grid=(n_blocks,),
        in_specs=[
            pl.BlockSpec((s_blk, arity), lambda i: (i, 0)),   # stacked index block
            pl.BlockSpec((E, D), lambda i: (0, 0)),           # embedding table (resident)
        ],
        out_specs=pl.BlockSpec((1, 1), lambda i: (0, 0)),     # resident accumulator
        compiler_params=pltpu.CompilerParams(
            dimension_semantics=("arbitrary",),               # reduction axis
            vmem_limit_bytes=vmem_limit,
        ),
    )(stacked, emb)
    return out[0, 0]


if __name__ == "__main__":
    key = jax.random.PRNGKey(0)
    num_entities, emb_dim = 32, 32
    B, arity, num_neg = 4, 3, 4

    k_emb, k_pos, k_neg = jax.random.split(key, 3)
    # deterministic "nn.Embedding" weights (synthetic init, N(0,1) like torch default)
    emb = jax.random.normal(k_emb, (num_entities, emb_dim), dtype=jnp.float32)
    x_pos = jax.random.randint(k_pos, (B, arity), 0, num_entities, dtype=jnp.int32)
    x_neg = jax.random.randint(k_neg, (B, num_neg, arity), 0, num_entities, dtype=jnp.int32)

    score = ad_forward(x_pos, x_neg, emb)
    jax.block_until_ready(score)

    # pure-JAX reference check (mirrors the PyTorch forward exactly)
    def calc_score_ref(idx, neg):
        e = emb[idx]                              # (B, arity, D) gather
        s = jnp.sum(e, axis=1)                    # sum over dim=1
        sq = jnp.sum(s * s, axis=-1)[:, None]     # ||.||^2, unsqueeze(-1)
        if neg:
            sq = 1.0 / sq
        return jnp.tanh(sq)

    sp = jnp.log(calc_score_ref(x_pos, False))                                  # (B, 1)
    sn = sum(jnp.log(calc_score_ref(x_neg[:, j, :], True)) for j in range(num_neg))
    ref = jnp.mean(sn + sp)
    assert jnp.allclose(score, ref, atol=1e-4), (float(score), float(ref))

    print("KERNEL_OK")
</pallas_src>

<mosaic_0001>
module attributes {stable_mosaic.version = 11 : i64} {
  func.func @ad_forward_kernel(%arg0: i32, %arg1: memref<24x3xi32, #tpu.memory_space<vmem>>, %arg2: memref<32x32xf32, #tpu.memory_space<vmem>>, %arg3: memref<1x1xf32, #tpu.memory_space<vmem>>) attributes {dimension_semantics = [#tpu.dimension_semantics<arbitrary>], iteration_bounds = array<i64: 1>, scalar_prefetch = 0 : i64, scratch_operands = 0 : i64, tpu.core_type = #tpu.core_type<tc>, window_params = [{transform_indices = @transform_0, window_bounds = array<i64: 24, 3>}, {pipeline_mode = #tpu.pipeline_mode<synchronous>, transform_indices = @transform_1, window_bounds = array<i64: 32, 32>}, {pipeline_mode = #tpu.pipeline_mode<synchronous>, transform_indices = @transform_2, window_bounds = array<i64: 1, 1>}]} {
    %c0_i32 = arith.constant 0 : i32
    %0 = arith.cmpi eq, %arg0, %c0_i32 : i32
    %1 = arith.extui %0 : i1 to i32
    %c0_i32_0 = arith.constant 0 : i32
    %2 = arith.cmpi ne, %1, %c0_i32_0 : i32
    scf.if %2 {
      %cst_14 = arith.constant 0.000000e+00 : f32
      %53 = vector.broadcast %cst_14 : f32 to vector<1x1xf32>
      %c0_15 = arith.constant 0 : index
      %c0_16 = arith.constant 0 : index
      %54 = vector.load %arg3[%c0_15, %c0_16] : memref<1x1xf32, #tpu.memory_space<vmem>>, vector<1x1xf32>
      tpu.vector_store %arg3[%c0_15, %c0_16], %53 {strides = array<i32>} : memref<1x1xf32, #tpu.memory_space<vmem>>, vector<1x1xf32>,
    } else {
    }
    %c0 = arith.constant 0 : index
    %c0_1 = arith.constant 0 : index
    %3 = vector.load %arg1[%c0, %c0_1] : memref<24x3xi32, #tpu.memory_space<vmem>>, vector<24x3xi32>
    %c0_2 = arith.constant 0 : index
    %c0_3 = arith.constant 0 : index
    %4 = vector.load %arg2[%c0_2, %c0_3] : memref<32x32xf32, #tpu.memory_space<vmem>>, vector<32x32xf32>
    %5 = tpu.iota {dimensions = array<i32: 1>} : vector<24x32xi32>
    %6 = vector.extract_strided_slice %3 {offsets = [0, 0], sizes = [24, 1], strides = [1, 1]} : vector<24x3xi32> to vector<24x1xi32>
    %7 = vector.broadcast %6 : vector<24x1xi32> to vector<24x32xi32>
    %8 = arith.cmpi eq, %7, %5 : vector<24x32xi32>
    %9 = arith.extui %8 : vector<24x32xi1> to vector<24x32xi32>
    %10 = vector.extract_strided_slice %3 {offsets = [0, 1], sizes = [24, 1], strides = [1, 1]} : vector<24x3xi32> to vector<24x1xi32>
    %11 = vector.broadcast %10 : vector<24x1xi32> to vector<24x32xi32>
    %12 = arith.cmpi eq, %11, %5 : vector<24x32xi32>
    %13 = arith.extui %12 : vector<24x32xi1> to vector<24x32xi32>
    %14 = arith.addi %9, %13 : vector<24x32xi32>
    %15 = vector.extract_strided_slice %3 {offsets = [0, 2], sizes = [24, 1], strides = [1, 1]} : vector<24x3xi32> to vector<24x1xi32>
    %16 = vector.broadcast %15 : vector<24x1xi32> to vector<24x32xi32>
    %17 = arith.cmpi eq, %16, %5 : vector<24x32xi32>
    %18 = arith.extui %17 : vector<24x32xi1> to vector<24x32xi32>
    %19 = arith.addi %14, %18 : vector<24x32xi32>
    %20 = arith.sitofp %19 : vector<24x32xi32> to vector<24x32xf32>
    %cst = arith.constant dense<0.000000e+00> : vector<24x32xf32>
    %21 = tpu.matmul %20, %4, %cst {dimension_numbers = #tpu.dot_dimension_numbers<[1], [0], [0], [1], [0, 0, 1, 1], [], []>} : vector<24x32xf32>, vector<32x32xf32>, vector<24x32xf32> -> vector<24x32xf32>
    %22 = arith.mulf %21, %21 : vector<24x32xf32>
    %cst_4 = arith.constant dense<0.000000e+00> : vector<24xf32>
    %23 = vector.multi_reduction <add>, %22, %cst_4 [1] : vector<24x32xf32> to vector<24xf32>
    %24 = vector.shape_cast %23 : vector<24xf32> to vector<24x1xf32>
    %c24_i32 = arith.constant 24 : i32
    %25 = arith.muli %arg0, %c24_i32 : i32
    %26 = tpu.iota {dimensions = array<i32: 0>} : vector<24x1xi32>
    %27 = vector.broadcast %25 : i32 to vector<24x1xi32>
    %28 = arith.addi %27, %26 : vector<24x1xi32>
    %c20_i32 = arith.constant 20 : i32
    %29 = vector.broadcast %c20_i32 : i32 to vector<24x1xi32>
    %30 = arith.cmpi slt, %28, %29 : vector<24x1xi32>
    %c4_i32 = arith.constant 4 : i32
    %31 = vector.broadcast %c4_i32 : i32 to vector<24x1xi32>
    %32 = arith.cmpi sge, %28, %31 : vector<24x1xi32>
    %33 = arith.andi %32, %30 : vector<24x1xi1>
    %34 = tpu.reciprocal %24 : vector<24x1xf32> -> vector<24x1xf32>
    %35 = arith.select %33, %34, %24 : vector<24x1xi1>, vector<24x1xf32>
    %cst_5 = arith.constant 1.000000e+00 : f32
    %36 = vector.broadcast %cst_5 : f32 to vector<24x1xf32>
    %37 = arith.select %30, %35, %36 : vector<24x1xi1>, vector<24x1xf32>
    %38 = math.tanh %37 : vector<24x1xf32>
    %39 = math.log %38 : vector<24x1xf32>
    %cst_6 = arith.constant 0.000000e+00 : f32
    %40 = vector.broadcast %cst_6 : f32 to vector<24x1xf32>
    %41 = arith.select %30, %39, %40 : vector<24x1xi1>, vector<24x1xf32>
    %c0_7 = arith.constant 0 : index
    %c0_8 = arith.constant 0 : index
    %42 = vector.load %arg3[%c0_7, %c0_8] : memref<1x1xf32, #tpu.memory_space<vmem>>, vector<1x1xf32>
    %43 = vector.shape_cast %41 : vector<24x1xf32> to vector<1x24x1xf32>
    %cst_9 = arith.constant dense<0.000000e+00> : vector<1xf32>
    %44 = vector.multi_reduction <add>, %43, %cst_9 [1, 2] : vector<1x24x1xf32> to vector<1xf32>
    %45 = vector.shape_cast %44 : vector<1xf32> to vector<1x1x1xf32>
    %46 = vector.extract %45[0, 0, 0] : f32 from vector<1x1x1xf32>
    %47 = vector.broadcast %46 : f32 to vector<1x1xf32>
    %48 = arith.addf %42, %47 : vector<1x1xf32>
    %c0_10 = arith.constant 0 : index
    %c0_11 = arith.constant 0 : index
    %49 = vector.load %arg3[%c0_10, %c0_11] : memref<1x1xf32, #tpu.memory_space<vmem>>, vector<1x1xf32>
    tpu.vector_store %arg3[%c0_10, %c0_11], %48 {strides = array<i32>} : memref<1x1xf32, #tpu.memory_space<vmem>>, vector<1x1xf32>,
    %c0_i32_12 = arith.constant 0 : i32
    %50 = arith.cmpi eq, %arg0, %c0_i32_12 : i32
    %51 = arith.extui %50 : i1 to i32
    %c0_i32_13 = arith.constant 0 : i32
    %52 = arith.cmpi ne, %51, %c0_i32_13 : i32
    scf.if %52 {
      %c0_14 = arith.constant 0 : index
      %c0_15 = arith.constant 0 : index
      %53 = vector.load %arg3[%c0_14, %c0_15] : memref<1x1xf32, #tpu.memory_space<vmem>>, vector<1x1xf32>
      %cst_16 = arith.constant 2.500000e-01 : f32
      %54 = vector.broadcast %cst_16 : f32 to vector<1x1xf32>
      %55 = arith.mulf %53, %54 : vector<1x1xf32>
      %c0_17 = arith.constant 0 : index
      %c0_18 = arith.constant 0 : index
      %56 = vector.load %arg3[%c0_17, %c0_18] : memref<1x1xf32, #tpu.memory_space<vmem>>, vector<1x1xf32>
      tpu.vector_store %arg3[%c0_17, %c0_18], %55 {strides = array<i32>} : memref<1x1xf32, #tpu.memory_space<vmem>>, vector<1x1xf32>,
    } else {
    }
    return
  }
  func.func @transform_0(%arg0: i32) -> (i32, i32) {
    %c0_i32 = arith.constant 0 : i32
    %c0_i32_0 = arith.constant 0 : i32
    return %arg0, %c0_i32 : i32, i32
  }
  func.func @transform_1(%arg0: i32) -> (i32, i32) {
    %c0_i32 = arith.constant 0 : i32
    %c0_i32_0 = arith.constant 0 : i32
    %c0_i32_1 = arith.constant 0 : i32
    return %c0_i32, %c0_i32_0 : i32, i32
  }
  func.func @transform_2(%arg0: i32) -> (i32, i32) {
    %c0_i32 = arith.constant 0 : i32
    %c0_i32_0 = arith.constant 0 : i32
    %c0_i32_1 = arith.constant 0 : i32
    return %c0_i32, %c0_i32_0 : i32, i32
  }
}

</mosaic_0001>

<bundles_post_ra>
// kernel: tpu_custom_call.1
= control target key start
LH: loop header
LB: loop body
LE: loop exit
PB: predicated region body
PF: predicated region fallthrough
CT: control target
= control target key end

     0   :  { %7 = vsyncpa [#allocation3], 0  ;;  %s483_s0 = inlined_call_operand.vmem [shape: s32[24,3], index: 0, kind: input, shape index: {}]   ;;  %s484_s1 = inlined_call_operand.hbm [shape: f32[32,32], index: 1, kind: input, shape index: {}]   ;;  %s485_s2 = inlined_call_operand.hbm [shape: f32[1,1], index: 2, kind: output, shape index: {}]  }
   0x1   :  { %8 = vsyncpa [#allocation4], 0  ;;  %s399_s9 = smov [#allocation2]   ;;  %s351_s13 = scalar_lea.hbm %s484_s1, 512 }
   0x2   :  { %s16_s10 = sshll.u32 %s399_s9, 4  ;;  %p352_p0 = scmp.ne.s32.totalorder %s484_s1, %s351_s13  ;;  %s17_s10 = int_to_ptr.vmem [resolvable:$true] %s16_s10 }
   0x3   :  { %p355_p1 = scmp.lt.u32.totalorder %s351_s13, %s484_s1 }
   0x5   :  { %p357_p2 = pnand %p355_p1, %p352_p0 }
   0x7   :  { %360 = shalt.err (!%p357_p2)
}
   0x8   :  { %s361_s18 = scalar_lea.vmem %s17_s10, 512  ;;  %p366_p4 = scmp.lt.s32.totalorder %s17_s10, %s17_s10 }
   0x9   :  { %p362_p3 = scmp.ne.s32.totalorder %s17_s10, %s361_s18  ;;  %p367_p5 = scmp.lt.s32.totalorder %s361_s18, %s361_s18 }
   0xb   :  { %p368_p6 = por %p367_p5, %p366_p4 }
   0xd   :  { %p369_p7 = pnand %p368_p6, %p362_p3 }
   0xf   :  { %372 = shalt.err (!%p369_p7)
}
  0x10   :  { %s400_s19 = smov 128   ;;  %s401_s20 = smov 8  }
  0x11   :  { %22 = dma.hbm_to_vmem [thread:$0]  %s484_s1, 512, %s17_s10, [#allocation3], %s400_s19, %s400_s19, %s401_s20  }
  0x12   :  { %395 = dma.done.wait [#allocation3], 512  }
  0x13   :  { %396 = vsyncadd [#allocation3], 4294966784  ;;  %v402_v0 = vmov 2   ;;  %v403_v1 = vmov 0   ;;  %v33_v2 = vld [vmem:[%s483_s0 + $0x8] sm:$0xff]  ;;  %v32_v3 = vld [vmem:[%s483_s0] sm:$0xff]  ;;  %v39_v14 = vlaneseq }
  0x14   :  { %328 = vset.pattern.permute.xlu1 %v402_v0  ;;  %326 = vset.pattern.permute.xlu0 %v403_v1  ;;  %v35_v4 = vld [vmem:[#allocation2] sm:$0xff]  ;;  %v36_v5 = vld [vmem:[#allocation2 + $0x8] sm:$0xff]  ;;  %v404_v6 = vmov 1   ;;  %v34_v8 = vld [vmem:[%s483_s0 + $0x10] sm:$0xff]  ;;  %v405_v9 = vmov 0.0|0.0   ;;  %vm30_vm0 = vcmask 0  }
  0x15   :  { %78 = vperm.xlu1 %328, %v33_v2   ;;  %45 = vperm.xlu0 %326, %v33_v2   ;;  %v305_v7 = vpack.c.bf16 %v36_v5, %v35_v4  ;;  %v37_v10 = vld [vmem:[#allocation2 + $0x10] sm:$0xff]  ;;  %v38_v11 = vld [vmem:[#allocation2 + $0x18] sm:$0xff]  ;;  %v406_v13 = vmov 0.0   ;;  %vm407_vm1 = vmmov 0   ;;  %v40_v15 = vand.u32 127, %v39_v14  ;;  %s408_s28 = smov [#allocation5]  }
  0x16   :  { %310 = vmatprep.subr.bf16.mxu1 %v405_v9  ;;  %304 = vmatprep.subr.bf16.mxu0 %v405_v9  ;;  %v308_v12 = vpack.c.bf16 %v38_v11, %v37_v10  ;;  %31 = vst.msk [vmem:[#allocation5] sm:$0x1] %vm30_vm0, %v406_v13  ;;  %vm95_vm7 = vcmask 261120   ;;  %v199_v56 = vshrl.u32 %v39_v14, 7  ;;  %vm237_vm14 = vcmask 7168   ;;  %s268_s29 = sshll.u32 %s408_s28, 4  ;;  %s269_s29 = int_to_ptr.vmem [resolvable:$true] %s268_s29 }
  0x17   :  { %312 = vmatpush3.bf16.msra.mxu1 %v305_v7  ;;  %306 = vmatpush3.bf16.msra.mxu0 %v305_v7  ;;  %s373_s30 = scalar_lea.vmem %s269_s29, 16  ;;  %s377_s3 = scalar_lea.vmem %s269_s29, 32 }
  0x18   :  { %311 = vmatprep.subr.bf16.mxu1 %v405_v9  ;;  %307 = vmatprep.subr.bf16.mxu0 %v405_v9  ;;  %vm209_vm12 = vcmp.ge.s32.totalorder %v199_v56, 4  ;;  %v201_v59 = vadd.s32 16, %v199_v56  ;;  %p374_p8 = scmp.ne.s32.totalorder %s269_s29, %s373_s30  ;;  %p378_p9 = scmp.lt.s32.totalorder %s269_s29, %s269_s29 }
  0x19   :  { %329 = vset.pattern.permute.xlu1 %v403_v1  ;;  %327 = vset.pattern.permute.xlu0 %v404_v6  ;;  %p379_p10 = scmp.lt.s32.totalorder %s377_s3, %s373_s30 }
  0x1a   :  { %60 = vperm.xlu0 %327, %v33_v2   ;;  %42 = vperm.xlu1 %329, %v32_v3   ;;  %vm208_vm13 = vcmp.lt.s32.totalorder %v201_v59, 20 }
  0x1b   :  { %313 = vmatpush3.bf16.msra.mxu1 %v308_v12  ;;  %309 = vmatpush3.bf16.msra.mxu0 %v308_v12  ;;  %p380_p11 = por %p379_p10, %p378_p9 }
  0x1c   :  { %298 = vmatprep.mubr.msk.f32.mxu1 %vm407_vm1, %v406_v13  ;;  %295 = vmatprep.mubr.msk.f32.mxu0 %vm407_vm1, %v406_v13 }
  0x1d   :  { %p381_p12 = pnand %p380_p11, %p374_p8 }
  0x1e   :  { %57 = vperm.xlu0 %327, %v32_v3   ;;  %48 = vperm.xlu1 %329, %v34_v8  }
  0x22   :  { %331 = vset.pattern.permute.xlu0 %v402_v0  ;;  %330 = vset.pattern.permute.xlu1 %v404_v6 }
  0x23   :  { %75 = vperm.xlu0 %331, %v32_v3   ;;  %63 = vperm.xlu1 %330, %v34_v8  }
  0x27   :  { %332 = vset.pattern.permute.xlu1 %v402_v0 }
  0x28   :  { %81 = vperm.xlu1 %332, %v34_v8  }
  0x94   :  { %v79_v16 = vpop.permute.xlu1 %78  ;;  %v46_v17 = vpop.permute.xlu0 %45 }
  0x95   :  { %vm51_vm2 = vcmp.eq.s32.totalorder %v46_v17, %v40_v15  ;;  %vm84_vm3 = vcmp.eq.s32.totalorder %v79_v16, %v40_v15 }
  0x96   :  { %v54_v18 = vsel %vm51_vm2, 1, %v403_v1  ;;  %v87_v23 = vsel %vm84_vm3, 1, %v403_v1 }
  0x99   :  { %v61_v19 = vpop.permute.xlu0 %60  ;;  %v43_v20 = vpop.permute.xlu1 %42 }
  0x9a   :  { %vm66_vm4 = vcmp.eq.s32.totalorder %v61_v19, %v40_v15  ;;  %vm50_vm6 = vcmp.eq.s32.totalorder %v43_v20, %v40_v15 }
  0x9b   :  { %v69_v21 = vsel %vm66_vm4, 1, %v403_v1  ;;  %v53_v29 = vsel %vm50_vm6, 1, %v403_v1 }
  0x9c   :  { %v72_v22 = vadd.s32 %v69_v21, %v54_v18 }
  0x9d   :  { %v58_v24 = vpop.permute.xlu0 %57  ;;  %v49_v25 = vpop.permute.xlu1 %48 }
  0x9e   :  { %v90_v26 = vadd.s32 %v87_v23, %v72_v22  ;;  %vm65_vm5 = vcmp.eq.s32.totalorder %v58_v24, %v40_v15  ;;  %vm52_vm10 = vcmp.eq.s32.totalorder %v49_v25, %v40_v15  ;;  %v236_v24 = vld [vmem:[#allocation5] sm:$0x1] }
  0x9f   :  { %v68_v28 = vsel %vm65_vm5, 1, %v403_v1  ;;  %v55_v36 = vsel %vm52_vm10, 1, %v403_v1 }
  0xa0   :  { %v93_v27 = vcvt.s32.f32 %v90_v26  ;;  %v71_v32 = vadd.s32 %v68_v28, %v53_v29 }
  0xa2   :  { %299 = vmatmul.mubr.msk.f32.vlgmr.msra.gmra.mrb[0].mxu1 %vm95_vm7, %v93_v27  ;;  %v76_v30 = vpop.permute.xlu0 %75  ;;  %v64_v31 = vpop.permute.xlu1 %63 }
  0xa3   :  { %vm83_vm8 = vcmp.eq.s32.totalorder %v76_v30, %v40_v15  ;;  %vm67_vm9 = vcmp.eq.s32.totalorder %v64_v31, %v40_v15  ;;  %301 = vmatprep.mubr.msk.f32.mxu1 %vm407_vm1, %v406_v13 }
  0xa4   :  { %v86_v33 = vsel %vm83_vm8, 1, %v403_v1  ;;  %v70_v35 = vsel %vm67_vm9, 1, %v403_v1 }
  0xa5   :  { %v89_v34 = vadd.s32 %v86_v33, %v71_v32  ;;  %v73_v39 = vadd.s32 %v70_v35, %v55_v36 }
  0xa7   :  { %v92_v37 = vcvt.s32.f32 %v89_v34  ;;  %v82_v38 = vpop.permute.xlu1 %81 }
  0xa8   :  { %vm85_vm11 = vcmp.eq.s32.totalorder %v82_v38, %v40_v15 }
  0xa9   :  { %v88_v40 = vsel %vm85_vm11, 1, %v403_v1  ;;  %296 = vmatmul.mubr.msk.f32.vlgmr.msra.gmra.mrb[0].mxu0 %vm95_vm7, %v92_v37 }
  0xaa   :  { %v91_v41 = vadd.s32 %v88_v40, %v73_v39 }
  0xac   :  { %v94_v42 = vcvt.s32.f32 %v91_v41 }
  0xae   :  { %302 = vmatmul.mubr.msk.f32.gmra.mrb[2].mxu1 %vm95_vm7, %v94_v42 }
 0x175   :  { %v176_v43 = vpop.f32.mrb[0].mxu1 }
 0x176   :  { %v300_v44 = vpop.f32.mrb[1].mxu1  ;;  %v186_v52 = vmul.f32 %v176_v43, %v176_v43 }
 0x178   :  { %v191_v54 = vsel %vm95_vm7, %v186_v52, 0.0 }
 0x17c   :  { %v171_v45 = vpop.f32.mrb[0].mxu0 }
 0x17d   :  { %v185_v46 = vmul.f32 %v171_v45, %v171_v45  ;;  %v297_v47 = vpop.f32.mrb[1].mxu0 }
 0x17f   :  { %v188_v48 = vsel %vm95_vm7, %v185_v46, 0.0 }
 0x180   :  { %189 = vadd.xlane.f32.xlu1 %v188_v48 }
 0x181   :  { %v181_v49 = vpop.f32.mrb[2].mxu1 }
 0x182   :  { %v187_v50 = vmul.f32 %v181_v49, %v181_v49  ;;  %v303_v51 = vpop.f32.mrb[3].mxu1 }
 0x184   :  { %v194_v53 = vsel %vm95_vm7, %v187_v50, 0.0 }
 0x185   :  { %195 = vadd.xlane.f32.xlu0 %v194_v53 }
 0x189   :  { %192 = vadd.xlane.f32.xlu0 %v191_v54 }
 0x20d   :  { %v190_v55 = vpop.xlane.xlu1 %189 }
 0x20e   :  { %333 = vrcp.f32 %v190_v55 }
 0x212   :  { %v196_v57 = vpop.xlane.xlu0 %195 }
 0x213   :  { %335 = vrcp.f32 %v196_v57 }
 0x216   :  { %v193_v58 = vpop.xlane.xlu0 %192 }
 0x217   :  { %337 = vrcp.f32 %v193_v58 }
 0x218   :  { %v334_v60 = vpop.eup %333 }
 0x219   :  { %v218_v61 = vsel %vm209_vm12, %v334_v60, %v190_v55 }
 0x21a   :  { %339 = vtanh.f32 %v218_v61 }
 0x21d   :  { %v336_v62 = vpop.eup %335 }
 0x21e   :  { %v220_v63 = vsel %vm208_vm13, %v336_v62, %v196_v57 }
 0x21f   :  { %v223_v0 = vsel %vm208_vm13, %v220_v63, 1.0 }
 0x220   :  { %341 = vtanh.f32 %v223_v0 }
 0x221   :  { %v338_v1 = vpop.eup %337 }
 0x222   :  { %343 = vtanh.f32 %v338_v1 }
 0x224   :  { %v340_v2 = vpop.eup %339 }
 0x225   :  { %345 = vlog2.f32 %v340_v2 }
 0x22a   :  { %v342_v3 = vpop.eup %341 }
 0x22b   :  { %347 = vlog2.f32 %v342_v3 }
 0x22c   :  { %v344_v4 = vpop.eup %343 }
 0x22d   :  { %349 = vlog2.f32 %v344_v4 }
 0x22f   :  { %v346_v5 = vpop.eup %345 }
 0x230   :  { %v228_v7 = vmul.f32 0.6931472, %v346_v5 }
 0x232   :  { %v238_v12 = vsel %vm237_vm14, %v228_v7, 0.0 }
 0x235   :  { %v348_v6 = vpop.eup %347 }
 0x236   :  { %v232_v8 = vmul.f32 0.6931472, %v348_v6 }
 0x237   :  { %v350_v9 = vpop.eup %349 }
 0x238   :  { %v230_v10 = vmul.f32 0.6931472, %v350_v9  ;;  %v235_v11 = vsel %vm208_vm13, %v232_v8, 0.0 }
 0x239   :  { %v241_v15 = vsel %vm237_vm14, %v235_v11, 0.0 }
 0x23a   :  { %v239_v13 = vsel %vm237_vm14, %v230_v10, 0.0 }
 0x23b   :  { %v240_v14 = vadd.f32 %v239_v13, %v238_v12 }
 0x23d   :  { %v242_v16 = vadd.f32 %v241_v15, %v240_v14 }
 0x23f   :  { %243 = vadd.xlane.f32.xlu1 %v242_v16 }
 0x2cc   :  { %v244_v17 = vpop.xlane.xlu1 %243 }
 0x2cd   :  { %v245_v18 = vrot.slane %v244_v17, 4 }
 0x2cf   :  { %v246_v19 = vadd.f32 %v245_v18, %v244_v17 }
 0x2d1   :  { %v247_v20 = vrot.slane %v246_v19, 2 }
 0x2d3   :  { %v248_v21 = vadd.f32 %v247_v20, %v246_v19 }
 0x2d5   :  { %v249_v22 = vrot.slane %v248_v21, 1 }
 0x2d7   :  { %v250_v23 = vadd.f32 %v249_v22, %v248_v21 }
 0x2d9   :  { %314 = vpush %v250_v23 }
 0x30a   :  { %s315_s0 = spop %314 }
 0x30b   :  { %v252_v25 = vstv %s315_s0 }
 0x30c   :  { %v253_v26 = vadd.f32 %v252_v25, %v236_v24 }
 0x30e   :  { %255 = vst.msk [vmem:[#allocation5] sm:$0x1] %vm30_vm0, %v253_v26 }
 0x315   :  { %v259_v27 = vld [vmem:[#allocation5] sm:$0x1] }
 0x316   :  { %v260_v28 = vmul.f32 0.25, %v259_v27 }
 0x318   :  { %261 = vst.msk [vmem:[#allocation5] sm:$0x1] %vm30_vm0, %v260_v28 }
 0x319   :  { %384 = shalt.err (!%p381_p12)
}
 0x31a   :  { %s385_s6 = scalar_lea.hbm %s485_s2, 16 }
 0x31b   :  { %p386_p13 = scmp.ne.s32.totalorder %s485_s2, %s385_s6  ;;  %p389_p0 = scmp.lt.u32.totalorder %s385_s6, %s485_s2 }
 0x31d   :  { %p391_p1 = pnand %p389_p0, %p386_p13 }
 0x31f   :  { %394 = shalt.err (!%p391_p1)
}
 0x320   :  { %271 = dma.vmem_to_hbm [thread:$0]  %s269_s29, 16, %s485_s2, [#allocation4]  }
 0x321   :  { %397 = dma.done.wait [#allocation4], 16  }
 0x322   :  { %398 = vsyncadd [#allocation4], 4294967280 }
 0x323   :  { %275 = vsyncpa [#allocation3], 1 }
 0x324   :  { %276 = vsyncpa [#allocation4], 1 }

</bundles_post_ra>
